<compile_context>
chip_gen: v7x
topology: tpu7x:2x2x1
jax: 0.10.0
libtpu: 0.0.40
codegen_flags: <defaults>
</compile_context>

<pallas_src>
import functools

import jax
import jax.numpy as jnp
from jax.experimental import pallas as pl
from jax.experimental.pallas import tpu as pltpu


def _duration_predictor_kernel(
    x_ref, m_ref,
    w1_ref, b1_ref, g1_ref, be1_ref,
    w2_ref, b2_ref,
    wpe_ref, wb_ref, bp_ref,
    o_ref,
    *, k_size,
):
    # x_ref : (Cin, T)  one batch element (channels on sublanes, time on lanes)
    # m_ref : (1, T)    mask row
    # w*_ref: (Cf, K*C) bf16 fused conv weights
    # b*/g*/be*: (Cf, 1) f32
    # wpe_ref: (Cf, 1) = proj_w * gamma2 ; wb_ref/bp_ref: (1, 1)
    f32 = jnp.float32
    x = x_ref[...].astype(f32)                 # (Cin, T)
    mask = m_ref[...].astype(f32)              # (1, T)
    t_len = x.shape[-1]
    pad = k_size // 2

    def im2col(h):
        # h: (C, T) f32 -> (K*C, T) bf16.
        # "same"-padded conv as ONE matmul: stack the K time-shifted copies of
        # h along the sublane (channel) axis.  Shifts come from a single static
        # zero-pad along lanes followed by static slices (all shapes static).
        c = h.shape[0]
        hp = jnp.concatenate(
            [jnp.zeros((c, pad), f32), h,
             jnp.zeros((c, k_size - 1 - pad), f32)],
            axis=1)                                      # (C, T + K - 1)
        pieces = [hp[:, k:k + t_len] for k in range(k_size)]
        return jnp.concatenate(pieces, axis=0).astype(jnp.bfloat16)

    def layer_norm(h, eps=1e-4):
        # LayerNorm over the channel axis (sublanes) == torch dim 1.
        mean = jnp.mean(h, axis=0, keepdims=True)
        var = jnp.mean((h - mean) ** 2, axis=0, keepdims=True)
        return (h - mean) * jax.lax.rsqrt(var + eps)

    # ---- block 1: conv -> relu -> LayerNorm (with affine) -----------------
    h = jnp.dot(w1_ref[...], im2col(x * mask), preferred_element_type=f32)
    h = jnp.maximum(h + b1_ref[...].astype(f32), 0.0)
    h = layer_norm(h) * g1_ref[...].astype(f32) + be1_ref[...].astype(f32)
    # dropout: identity (inference)

    # ---- block 2: conv -> relu -> LayerNorm (affine folded into proj) -----
    h = jnp.dot(w2_ref[...], im2col(h * mask), preferred_element_type=f32)
    h = jnp.maximum(h + b2_ref[...].astype(f32), 0.0)
    h = layer_norm(h)
    # dropout: identity (inference)

    # ---- 1x1 projection: VPU mul + sublane reduce (no N=1 MXU matmul) -----
    # original: proj((hn*g2 + be2) * mask) * mask
    #         = ((sum_c (wp*g2)_c * hn_c + sum_c wp_c*be2_c) * mask + bp) * mask
    pre = jnp.sum(h * wpe_ref[...].astype(f32), axis=0, keepdims=True)   # (1,T)
    out = (pre + wb_ref[...].astype(f32)) * mask + bp_ref[...].astype(f32)
    o_ref[...] = (out * mask).astype(o_ref.dtype)


def duration_predictor(x, x_mask, params):
    """x: [B, Cin, T], x_mask: [B, 1, T] -> [B, 1, T] (PyTorch layout)."""
    B, Cin, T = x.shape
    w1 = params["conv1_w"]            # [Cf, Cin, K]
    b1 = params["conv1_b"]            # [Cf]
    g1 = params["norm1_g"]            # [Cf]
    be1 = params["norm1_b"]           # [Cf]
    w2 = params["conv2_w"]            # [Cf, Cf, K]
    b2 = params["conv2_b"]
    g2 = params["norm2_g"]
    be2 = params["norm2_b"]
    wp = params["proj_w"]             # [1, Cf, 1]
    bp = params["proj_b"]             # [1]

    Cf, _, K = w1.shape
    assert K % 2 == 1, "odd kernel_size expected ('same' padding)"

    f32, bf16 = jnp.float32, jnp.bfloat16

    # Fused conv weights: (Cf, K*C) with column index k*C + c == tap k, in-ch c
    # (matches the in-kernel im2col stacking order).  Cast once to bf16 so the
    # MXU runs its native path; f32 accumulation is kept via
    # preferred_element_type inside the kernel.
    w1_r = jnp.transpose(w1, (0, 2, 1)).reshape(Cf, K * Cin).astype(bf16)
    w2_r = jnp.transpose(w2, (0, 2, 1)).reshape(Cf, K * Cf).astype(bf16)
    b1_c = b1.reshape(Cf, 1).astype(f32)
    g1_c = g1.reshape(Cf, 1).astype(f32)
    be1_c = be1.reshape(Cf, 1).astype(f32)
    b2_c = b2.reshape(Cf, 1).astype(f32)

    # Fold LayerNorm-2's affine into the 1x1 projection.
    wp_row = wp.reshape(Cf)
    wpe = (wp_row * g2).reshape(Cf, 1).astype(f32)
    wb = jnp.sum(wp_row * be2).reshape(1, 1).astype(f32)
    bp_c = bp.reshape(1, 1).astype(f32)

    # Scoped-VMEM budget: double-buffered per-step inputs + in-kernel work set
    # (f32 intermediates + bf16 im2col), with 2x headroom, clamped to 64 MiB.
    bytes_per_step = (4 * T * (Cin + 2)                  # x + mask + out (f32)
                      + 2 * K * Cf * (Cin + Cf)          # bf16 conv weights
                      + 4 * 8 * Cf) * 2                  # small params, 2x buf
    work_bytes = 4 * T * (3 * Cf + Cin) + 2 * T * K * (Cin + Cf)
    vmem_limit = int(min(max(32 * 1024 * 1024, 2 * (bytes_per_step + work_bytes)),
                         64 * 1024 * 1024))

    full = lambda shape: pl.BlockSpec(shape, lambda b: (0,) * len(shape))
    kernel = functools.partial(_duration_predictor_kernel, k_size=K)

    out = pl.pallas_call(
        kernel,
        out_shape=jax.ShapeDtypeStruct((B, 1, T), x.dtype),
        grid=(B,),
        in_specs=[
            pl.BlockSpec((None, Cin, T), lambda b: (b, 0, 0)),   # x (no transpose)
            pl.BlockSpec((None, 1, T), lambda b: (b, 0, 0)),     # mask (lane-dense)
            full((Cf, K * Cin)),   # fused conv1 weight (bf16, VMEM-resident)
            full((Cf, 1)),         # conv1 bias
            full((Cf, 1)),         # gamma1
            full((Cf, 1)),         # beta1
            full((Cf, K * Cf)),    # fused conv2 weight (bf16)
            full((Cf, 1)),         # conv2 bias
            full((Cf, 1)),         # proj_w * gamma2
            full((1, 1)),          # sum(proj_w * beta2)
            full((1, 1)),          # proj bias
        ],
        out_specs=pl.BlockSpec((None, 1, T), lambda b: (b, 0, 0)),
        compiler_params=pltpu.CompilerParams(
            dimension_semantics=("parallel",),
            vmem_limit_bytes=vmem_limit),
    )(x, x_mask, w1_r, b1_c, g1_c, be1_c, w2_r, b2_c, wpe, wb, bp_c)

    return out                                           # already [B, 1, T]


# ----------------------- pure-JAX f32 reference -----------------------
def _reference(x, x_mask, params):
    def conv1d(h, w, b, pad):
        out = jax.lax.conv_general_dilated(
            h, w, window_strides=(1,), padding=[(pad, pad)],
            dimension_numbers=("NCH", "OIH", "NCH"))
        return out + b[None, :, None]

    def layer_norm(h, g, b, eps=1e-4):
        mean = jnp.mean(h, axis=1, keepdims=True)
        var = jnp.mean((h - mean) ** 2, axis=1, keepdims=True)
        hn = (h - mean) * jax.lax.rsqrt(var + eps)
        return hn * g[None, :, None] + b[None, :, None]

    K = params["conv1_w"].shape[-1]
    pad = K // 2
    h = conv1d(x * x_mask, params["conv1_w"], params["conv1_b"], pad)
    h = jnp.maximum(h, 0.0)
    h = layer_norm(h, params["norm1_g"], params["norm1_b"])
    h = conv1d(h * x_mask, params["conv2_w"], params["conv2_b"], pad)
    h = jnp.maximum(h, 0.0)
    h = layer_norm(h, params["norm2_g"], params["norm2_b"])
    h = conv1d(h * x_mask, params["proj_w"], params["proj_b"], 0)
    return h * x_mask


if __name__ == "__main__":
    B, Cin, Cf, T, K = 2, 16, 32, 128, 3

    key = jax.random.PRNGKey(0)
    keys = jax.random.split(key, 8)

    x = jax.random.normal(keys[0], (B, Cin, T), dtype=jnp.float32)
    lengths = jnp.array([T, T - 37], dtype=jnp.int32)
    x_mask = (jnp.arange(T)[None, :] < lengths[:, None]).astype(jnp.float32)
    x_mask = x_mask[:, None, :]                        # [B, 1, T]

    params = {
        "conv1_w": 0.1 * jax.random.normal(keys[1], (Cf, Cin, K), jnp.float32),
        "conv1_b": 0.1 * jax.random.normal(keys[2], (Cf,), jnp.float32),
        "norm1_g": jnp.ones((Cf,), jnp.float32),
        "norm1_b": jnp.zeros((Cf,), jnp.float32),
        "conv2_w": 0.1 * jax.random.normal(keys[3], (Cf, Cf, K), jnp.float32),
        "conv2_b": 0.1 * jax.random.normal(keys[4], (Cf,), jnp.float32),
        "norm2_g": 1.0 + 0.1 * jax.random.normal(keys[5], (Cf,), jnp.float32),
        "norm2_b": 0.1 * jax.random.normal(keys[6], (Cf,), jnp.float32),
        "proj_w": 0.1 * jax.random.normal(keys[7], (1, Cf, 1), jnp.float32),
        "proj_b": jnp.zeros((1,), jnp.float32),
    }

    out = duration_predictor(x, x_mask, params)
    out = jax.block_until_ready(out)

    ref = _reference(x, x_mask, params)
    assert out.shape == (B, 1, T), out.shape
    # bf16 MXU operands (f32 accumulate) => looser tolerance vs the f32 ref.
    assert jnp.allclose(out, ref, atol=5e-2, rtol=5e-2), (
        float(jnp.max(jnp.abs(out - ref))))

    print("KERNEL_OK")
</pallas_src>

<mosaic_0001>
module attributes {stable_mosaic.version = 11 : i64} {
  func.func @_duration_predictor_kernel(%arg0: i32, %arg1: memref<1x16x128xf32, #tpu.memory_space<vmem>>, %arg2: memref<1x1x128xf32, #tpu.memory_space<vmem>>, %arg3: memref<32x48xbf16, #tpu.memory_space<vmem>>, %arg4: memref<32x1xf32, #tpu.memory_space<vmem>>, %arg5: memref<32x1xf32, #tpu.memory_space<vmem>>, %arg6: memref<32x1xf32, #tpu.memory_space<vmem>>, %arg7: memref<32x96xbf16, #tpu.memory_space<vmem>>, %arg8: memref<32x1xf32, #tpu.memory_space<vmem>>, %arg9: memref<32x1xf32, #tpu.memory_space<vmem>>, %arg10: memref<1x1xf32, #tpu.memory_space<vmem>>, %arg11: memref<1x1xf32, #tpu.memory_space<vmem>>, %arg12: memref<1x1x128xf32, #tpu.memory_space<vmem>>) attributes {dimension_semantics = [#tpu.dimension_semantics<parallel>], iteration_bounds = array<i64: 2>, scalar_prefetch = 0 : i64, scratch_operands = 0 : i64, tpu.core_type = #tpu.core_type<tc>, window_params = [{transform_indices = @transform_0, window_bounds = array<i64: 1, 16, 128>}, {transform_indices = @transform_1, window_bounds = array<i64: 1, 1, 128>}, {pipeline_mode = #tpu.pipeline_mode<synchronous>, transform_indices = @transform_2, window_bounds = array<i64: 32, 48>}, {pipeline_mode = #tpu.pipeline_mode<synchronous>, transform_indices = @transform_3, window_bounds = array<i64: 32, 1>}, {pipeline_mode = #tpu.pipeline_mode<synchronous>, transform_indices = @transform_4, window_bounds = array<i64: 32, 1>}, {pipeline_mode = #tpu.pipeline_mode<synchronous>, transform_indices = @transform_5, window_bounds = array<i64: 32, 1>}, {pipeline_mode = #tpu.pipeline_mode<synchronous>, transform_indices = @transform_6, window_bounds = array<i64: 32, 96>}, {pipeline_mode = #tpu.pipeline_mode<synchronous>, transform_indices = @transform_7, window_bounds = array<i64: 32, 1>}, {pipeline_mode = #tpu.pipeline_mode<synchronous>, transform_indices = @transform_8, window_bounds = array<i64: 32, 1>}, {pipeline_mode = #tpu.pipeline_mode<synchronous>, transform_indices = @transform_9, window_bounds = array<i64: 1, 1>}, {pipeline_mode = #tpu.pipeline_mode<synchronous>, transform_indices = @transform_10, window_bounds = array<i64: 1, 1>}, {transform_indices = @transform_11, window_bounds = array<i64: 1, 1, 128>}]} {
    %c0 = arith.constant 0 : index
    %c0_0 = arith.constant 0 : index
    %c0_1 = arith.constant 0 : index
    %0 = vector.load %arg1[%c0, %c0_0, %c0_1] : memref<1x16x128xf32, #tpu.memory_space<vmem>>, vector<1x16x128xf32>
    %1 = vector.shape_cast %0 : vector<1x16x128xf32> to vector<16x128xf32>
    %c0_2 = arith.constant 0 : index
    %c0_3 = arith.constant 0 : index
    %c0_4 = arith.constant 0 : index
    %2 = vector.load %arg2[%c0_2, %c0_3, %c0_4] : memref<1x1x128xf32, #tpu.memory_space<vmem>>, vector<1x1x128xf32>
    %3 = vector.shape_cast %2 : vector<1x1x128xf32> to vector<1x128xf32>
    %c0_5 = arith.constant 0 : index
    %c0_6 = arith.constant 0 : index
    %4 = vector.load %arg3[%c0_5, %c0_6] : memref<32x48xbf16, #tpu.memory_space<vmem>>, vector<32x48xbf16>
    %5 = vector.broadcast %3 : vector<1x128xf32> to vector<16x128xf32>
    %6 = arith.mulf %1, %5 : vector<16x128xf32>
    %cst = arith.constant 0.000000e+00 : f32
    %7 = vector.broadcast %cst : f32 to vector<16x1xf32>
    %cst_7 = arith.constant 0.000000e+00 : f32
    %8 = vector.broadcast %cst_7 : f32 to vector<16x1xf32>
    %9 = tpu.concatenate %7, %6, %8 in 1 : vector<16x1xf32>, vector<16x128xf32>, vector<16x1xf32> -> vector<16x130xf32>
    %10 = vector.extract_strided_slice %9 {offsets = [0, 0], sizes = [16, 128], strides = [1, 1]} : vector<16x130xf32> to vector<16x128xf32>
    %11 = vector.extract_strided_slice %9 {offsets = [0, 1], sizes = [16, 128], strides = [1, 1]} : vector<16x130xf32> to vector<16x128xf32>
    %12 = vector.extract_strided_slice %9 {offsets = [0, 2], sizes = [16, 128], strides = [1, 1]} : vector<16x130xf32> to vector<16x128xf32>
    %13 = tpu.concatenate %10, %11, %12 in 0 : vector<16x128xf32>, vector<16x128xf32>, vector<16x128xf32> -> vector<48x128xf32>
    %14 = arith.truncf %13 : vector<48x128xf32> to vector<48x128xbf16>
    %cst_8 = arith.constant dense<0.000000e+00> : vector<32x128xf32>
    %15 = tpu.matmul %4, %14, %cst_8 {dimension_numbers = #tpu.dot_dimension_numbers<[1], [0], [0], [1], [0, 0, 1, 1], [], []>} : vector<32x48xbf16>, vector<48x128xbf16>, vector<32x128xf32> -> vector<32x128xf32>
    %c0_9 = arith.constant 0 : index
    %c0_10 = arith.constant 0 : index
    %16 = vector.load %arg4[%c0_9, %c0_10] : memref<32x1xf32, #tpu.memory_space<vmem>>, vector<32x1xf32>
    %17 = vector.broadcast %16 : vector<32x1xf32> to vector<32x128xf32>
    %18 = arith.addf %15, %17 : vector<32x128xf32>
    %cst_11 = arith.constant 0.000000e+00 : f32
    %19 = vector.broadcast %cst_11 : f32 to vector<32x128xf32>
    %20 = arith.maximumf %18, %19 : vector<32x128xf32>
    %cst_12 = arith.constant dense<0.000000e+00> : vector<128xf32>
    %21 = vector.multi_reduction <add>, %20, %cst_12 [0] : vector<32x128xf32> to vector<128xf32>
    %22 = vector.shape_cast %21 : vector<128xf32> to vector<1x128xf32>
    %cst_13 = arith.constant 3.200000e+01 : f32
    %23 = vector.broadcast %cst_13 : f32 to vector<1x128xf32>
    %24 = arith.divf %22, %23 : vector<1x128xf32>
    %25 = vector.broadcast %24 : vector<1x128xf32> to vector<32x128xf32>
    %26 = arith.subf %20, %25 : vector<32x128xf32>
    %27 = arith.mulf %26, %26 : vector<32x128xf32>
    %cst_14 = arith.constant dense<0.000000e+00> : vector<128xf32>
    %28 = vector.multi_reduction <add>, %27, %cst_14 [0] : vector<32x128xf32> to vector<128xf32>
    %29 = vector.shape_cast %28 : vector<128xf32> to vector<1x128xf32>
    %cst_15 = arith.constant 3.200000e+01 : f32
    %30 = vector.broadcast %cst_15 : f32 to vector<1x128xf32>
    %31 = arith.divf %29, %30 : vector<1x128xf32>
    %32 = vector.broadcast %24 : vector<1x128xf32> to vector<32x128xf32>
    %33 = arith.subf %20, %32 : vector<32x128xf32>
    %cst_16 = arith.constant 9.99999974E-5 : f32
    %34 = vector.broadcast %cst_16 : f32 to vector<1x128xf32>
    %35 = arith.addf %31, %34 : vector<1x128xf32>
    %36 = math.rsqrt %35 : vector<1x128xf32>
    %37 = vector.broadcast %36 : vector<1x128xf32> to vector<32x128xf32>
    %38 = arith.mulf %33, %37 : vector<32x128xf32>
    %c0_17 = arith.constant 0 : index
    %c0_18 = arith.constant 0 : index
    %39 = vector.load %arg5[%c0_17, %c0_18] : memref<32x1xf32, #tpu.memory_space<vmem>>, vector<32x1xf32>
    %40 = vector.broadcast %39 : vector<32x1xf32> to vector<32x128xf32>
    %41 = arith.mulf %38, %40 : vector<32x128xf32>
    %c0_19 = arith.constant 0 : index
    %c0_20 = arith.constant 0 : index
    %42 = vector.load %arg6[%c0_19, %c0_20] : memref<32x1xf32, #tpu.memory_space<vmem>>, vector<32x1xf32>
    %43 = vector.broadcast %42 : vector<32x1xf32> to vector<32x128xf32>
    %44 = arith.addf %41, %43 : vector<32x128xf32>
    %c0_21 = arith.constant 0 : index
    %c0_22 = arith.constant 0 : index
    %45 = vector.load %arg7[%c0_21, %c0_22] : memref<32x96xbf16, #tpu.memory_space<vmem>>, vector<32x96xbf16>
    %46 = vector.broadcast %3 : vector<1x128xf32> to vector<32x128xf32>
    %47 = arith.mulf %44, %46 : vector<32x128xf32>
    %cst_23 = arith.constant 0.000000e+00 : f32
    %48 = vector.broadcast %cst_23 : f32 to vector<32x1xf32>
    %cst_24 = arith.constant 0.000000e+00 : f32
    %49 = vector.broadcast %cst_24 : f32 to vector<32x1xf32>
    %50 = tpu.concatenate %48, %47, %49 in 1 : vector<32x1xf32>, vector<32x128xf32>, vector<32x1xf32> -> vector<32x130xf32>
    %51 = vector.extract_strided_slice %50 {offsets = [0, 0], sizes = [32, 128], strides = [1, 1]} : vector<32x130xf32> to vector<32x128xf32>
    %52 = vector.extract_strided_slice %50 {offsets = [0, 1], sizes = [32, 128], strides = [1, 1]} : vector<32x130xf32> to vector<32x128xf32>
    %53 = vector.extract_strided_slice %50 {offsets = [0, 2], sizes = [32, 128], strides = [1, 1]} : vector<32x130xf32> to vector<32x128xf32>
    %54 = tpu.concatenate %51, %52, %53 in 0 : vector<32x128xf32>, vector<32x128xf32>, vector<32x128xf32> -> vector<96x128xf32>
    %55 = arith.truncf %54 : vector<96x128xf32> to vector<96x128xbf16>
    %cst_25 = arith.constant dense<0.000000e+00> : vector<32x128xf32>
    %56 = tpu.matmul %45, %55, %cst_25 {dimension_numbers = #tpu.dot_dimension_numbers<[1], [0], [0], [1], [0, 0, 1, 1], [], []>} : vector<32x96xbf16>, vector<96x128xbf16>, vector<32x128xf32> -> vector<32x128xf32>
    %c0_26 = arith.constant 0 : index
    %c0_27 = arith.constant 0 : index
    %57 = vector.load %arg8[%c0_26, %c0_27] : memref<32x1xf32, #tpu.memory_space<vmem>>, vector<32x1xf32>
    %58 = vector.broadcast %57 : vector<32x1xf32> to vector<32x128xf32>
    %59 = arith.addf %56, %58 : vector<32x128xf32>
    %cst_28 = arith.constant 0.000000e+00 : f32
    %60 = vector.broadcast %cst_28 : f32 to vector<32x128xf32>
    %61 = arith.maximumf %59, %60 : vector<32x128xf32>
    %cst_29 = arith.constant dense<0.000000e+00> : vector<128xf32>
    %62 = vector.multi_reduction <add>, %61, %cst_29 [0] : vector<32x128xf32> to vector<128xf32>
    %63 = vector.shape_cast %62 : vector<128xf32> to vector<1x128xf32>
    %cst_30 = arith.constant 3.200000e+01 : f32
    %64 = vector.broadcast %cst_30 : f32 to vector<1x128xf32>
    %65 = arith.divf %63, %64 : vector<1x128xf32>
    %66 = vector.broadcast %65 : vector<1x128xf32> to vector<32x128xf32>
    %67 = arith.subf %61, %66 : vector<32x128xf32>
    %68 = arith.mulf %67, %67 : vector<32x128xf32>
    %cst_31 = arith.constant dense<0.000000e+00> : vector<128xf32>
    %69 = vector.multi_reduction <add>, %68, %cst_31 [0] : vector<32x128xf32> to vector<128xf32>
    %70 = vector.shape_cast %69 : vector<128xf32> to vector<1x128xf32>
    %cst_32 = arith.constant 3.200000e+01 : f32
    %71 = vector.broadcast %cst_32 : f32 to vector<1x128xf32>
    %72 = arith.divf %70, %71 : vector<1x128xf32>
    %73 = vector.broadcast %65 : vector<1x128xf32> to vector<32x128xf32>
    %74 = arith.subf %61, %73 : vector<32x128xf32>
    %cst_33 = arith.constant 9.99999974E-5 : f32
    %75 = vector.broadcast %cst_33 : f32 to vector<1x128xf32>
    %76 = arith.addf %72, %75 : vector<1x128xf32>
    %77 = math.rsqrt %76 : vector<1x128xf32>
    %78 = vector.broadcast %77 : vector<1x128xf32> to vector<32x128xf32>
    %79 = arith.mulf %74, %78 : vector<32x128xf32>
    %c0_34 = arith.constant 0 : index
    %c0_35 = arith.constant 0 : index
    %80 = vector.load %arg9[%c0_34, %c0_35] : memref<32x1xf32, #tpu.memory_space<vmem>>, vector<32x1xf32>
    %81 = vector.broadcast %80 : vector<32x1xf32> to vector<32x128xf32>
    %82 = arith.mulf %79, %81 : vector<32x128xf32>
    %cst_36 = arith.constant dense<0.000000e+00> : vector<128xf32>
    %83 = vector.multi_reduction <add>, %82, %cst_36 [0] : vector<32x128xf32> to vector<128xf32>
    %84 = vector.shape_cast %83 : vector<128xf32> to vector<1x128xf32>
    %c0_37 = arith.constant 0 : index
    %c0_38 = arith.constant 0 : index
    %85 = vector.load %arg10[%c0_37, %c0_38] : memref<1x1xf32, #tpu.memory_space<vmem>>, vector<1x1xf32>
    %86 = vector.broadcast %85 : vector<1x1xf32> to vector<1x128xf32>
    %87 = arith.addf %84, %86 : vector<1x128xf32>
    %88 = arith.mulf %87, %3 : vector<1x128xf32>
    %c0_39 = arith.constant 0 : index
    %c0_40 = arith.constant 0 : index
    %89 = vector.load %arg11[%c0_39, %c0_40] : memref<1x1xf32, #tpu.memory_space<vmem>>, vector<1x1xf32>
    %90 = vector.broadcast %89 : vector<1x1xf32> to vector<1x128xf32>
    %91 = arith.addf %88, %90 : vector<1x128xf32>
    %92 = arith.mulf %91, %3 : vector<1x128xf32>
    %c0_41 = arith.constant 0 : index
    %c0_42 = arith.constant 0 : index
    %c0_43 = arith.constant 0 : index
    %93 = vector.load %arg12[%c0_41, %c0_42, %c0_43] : memref<1x1x128xf32, #tpu.memory_space<vmem>>, vector<1x1x128xf32>
    %94 = vector.shape_cast %93 : vector<1x1x128xf32> to vector<1x128xf32>
    %95 = vector.shape_cast %92 : vector<1x128xf32> to vector<1x1x128xf32>
    tpu.vector_store %arg12[%c0_41, %c0_42, %c0_43], %95 {strides = array<i32>} : memref<1x1x128xf32, #tpu.memory_space<vmem>>, vector<1x1x128xf32>,
    return
  }
  func.func @transform_0(%arg0: i32) -> (i32, i32, i32) {
    %c0_i32 = arith.constant 0 : i32
    %c0_i32_0 = arith.constant 0 : i32
    %c0_i32_1 = arith.constant 0 : i32
    return %arg0, %c0_i32, %c0_i32_0 : i32, i32, i32
  }
  func.func @transform_1(%arg0: i32) -> (i32, i32, i32) {
    %c0_i32 = arith.constant 0 : i32
    %c0_i32_0 = arith.constant 0 : i32
    %c0_i32_1 = arith.constant 0 : i32
    return %arg0, %c0_i32, %c0_i32_0 : i32, i32, i32
  }
  func.func @transform_2(%arg0: i32) -> (i32, i32) {
    %c0_i32 = arith.constant 0 : i32
    %c0_i32_0 = arith.constant 0 : i32
    %c0_i32_1 = arith.constant 0 : i32
    return %c0_i32, %c0_i32_0 : i32, i32
  }
  func.func @transform_3(%arg0: i32) -> (i32, i32) {
    %c0_i32 = arith.constant 0 : i32
    %c0_i32_0 = arith.constant 0 : i32
    %c0_i32_1 = arith.constant 0 : i32
    return %c0_i32, %c0_i32_0 : i32, i32
  }
  func.func @transform_4(%arg0: i32) -> (i32, i32) {
    %c0_i32 = arith.constant 0 : i32
    %c0_i32_0 = arith.constant 0 : i32
    %c0_i32_1 = arith.constant 0 : i32
    return %c0_i32, %c0_i32_0 : i32, i32
  }
  func.func @transform_5(%arg0: i32) -> (i32, i32) {
    %c0_i32 = arith.constant 0 : i32
    %c0_i32_0 = arith.constant 0 : i32
    %c0_i32_1 = arith.constant 0 : i32
    return %c0_i32, %c0_i32_0 : i32, i32
  }
  func.func @transform_6(%arg0: i32) -> (i32, i32) {
    %c0_i32 = arith.constant 0 : i32
    %c0_i32_0 = arith.constant 0 : i32
    %c0_i32_1 = arith.constant 0 : i32
    return %c0_i32, %c0_i32_0 : i32, i32
  }
  func.func @transform_7(%arg0: i32) -> (i32, i32) {
    %c0_i32 = arith.constant 0 : i32
    %c0_i32_0 = arith.constant 0 : i32
    %c0_i32_1 = arith.constant 0 : i32
    return %c0_i32, %c0_i32_0 : i32, i32
  }
  func.func @transform_8(%arg0: i32) -> (i32, i32) {
    %c0_i32 = arith.constant 0 : i32
    %c0_i32_0 = arith.constant 0 : i32
    %c0_i32_1 = arith.constant 0 : i32
    return %c0_i32, %c0_i32_0 : i32, i32
  }
  func.func @transform_9(%arg0: i32) -> (i32, i32) {
    %c0_i32 = arith.constant 0 : i32
    %c0_i32_0 = arith.constant 0 : i32
    %c0_i32_1 = arith.constant 0 : i32
    return %c0_i32, %c0_i32_0 : i32, i32
  }
  func.func @transform_10(%arg0: i32) -> (i32, i32) {
    %c0_i32 = arith.constant 0 : i32
    %c0_i32_0 = arith.constant 0 : i32
    %c0_i32_1 = arith.constant 0 : i32
    return %c0_i32, %c0_i32_0 : i32, i32
  }
  func.func @transform_11(%arg0: i32) -> (i32, i32, i32) {
    %c0_i32 = arith.constant 0 : i32
    %c0_i32_0 = arith.constant 0 : i32
    %c0_i32_1 = arith.constant 0 : i32
    return %arg0, %c0_i32, %c0_i32_0 : i32, i32, i32
  }
}

</mosaic_0001>

<bundles_post_ra>
// kernel: tpu_custom_call.1
= control target key start
LH: loop header
LB: loop body
LE: loop exit
PB: predicated region body
PF: predicated region fallthrough
CT: control target
= control target key end

     0   :  { %s1598_s0 = inlined_call_operand.vmem [shape: f32[2,16,128], index: 0, kind: input, shape index: {}]   ;;  %s1599_s1 = inlined_call_operand.vmem [shape: f32[2,1,128], index: 1, kind: input, shape index: {}]   ;;  %s1600_s2 = inlined_call_operand.vmem [shape: bf16[32,48], index: 2, kind: input, shape index: {}]   ;;  %s1601_s3 = inlined_call_operand.vmem [shape: f32[32,1], index: 3, kind: input, shape index: {}]   ;;  %s1602_s4 = inlined_call_operand.vmem [shape: f32[32,1], index: 4, kind: input, shape index: {}]   ;;  %s1603_s5 = inlined_call_operand.vmem [shape: f32[32,1], index: 5, kind: input, shape index: {}]   ;;  %s1604_s6 = inlined_call_operand.vmem [shape: bf16[32,96], index: 6, kind: input, shape index: {}]   ;;  %s1605_s7 = inlined_call_operand.vmem [shape: f32[32,1], index: 7, kind: input, shape index: {}]   ;;  %s1606_s8 = inlined_call_operand.vmem [shape: f32[32,1], index: 8, kind: input, shape index: {}]   ;;  %s1607_s9 = inlined_call_operand.<no memory space> [shape: f32[1,1], index: 9, kind: input, shape index: {}]   ;;  %s1608_s11 = inlined_call_operand.hbm [shape: f32[2,1,128], index: 11, kind: output, shape index: {}]   ;;  %s1609_s10 = inlined_call_operand.<no memory space> [shape: f32[1,1], index: 10, kind: input, shape index: {}]  }
   0x1   :  { %v16_v0 = vstv %s1607_s9  ;;  %v18_v1 = vstv %s1609_s10 }
   0x2   :  { %17 = vst [vmem:[#allocation2] sm:$0x1] %v16_v0  ;;  %19 = vst [vmem:[#allocation3] sm:$0x1] %v18_v1 }
   0x3   :  { %20 = vsyncpa [#allocation5], 0 }
   0x4   :  { %22 = vsyncpa [#allocation5 + $0x1], 0  ;;  %s1345_s21 = smov 0   ;;  %s1347_s22 = smov 0  }
   0x5   :  { %s1349_s23 = smov 0   ;;  %s1351_s24 = smov 0  }
   0x6 LB: > { %s1366_s9 = sadd.s32 4294967295, %s1272_s24   ;;  %s1010_s10 = sadd.s32 4294967294, %s1272_s24   ;;  %s1272_s24 = sphi %s1351_s24, %s1620_s24   ;;  %s1268_s23 = sphi %s1349_s23, %s1619_s23   ;;  %s1264_s22 = sphi %s1347_s22, %s1618_s22   ;;  %s1260_s21 = sphi %s1345_s21, %s1617_s21  }
   0x7   : > { %s1370_s25 = sadd.s32 1, %s1272_s24   ;;  %s276_s26 = sadd.s32 1, %s1268_s23 }
   0x8   : > { %s273_s27 = ssub.s32 %s1272_s24, %s1370_s25  ;;  %p286_p0 = scmp.ne.s32.totalorder %s1268_s23, %s1264_s22 }
   0x9   : > { %p274_p1 = scmp.eq.s32.totalorder %s273_s27, 0  ;;  %p287_p2 = scmp.eq.s32.totalorder %s1366_s9, 1 }
   0xa   : > { %p292_p3 = scmp.ne.s32.totalorder %s1264_s22, %s1260_s21  ;;  %p293_p4 = scmp.eq.s32.totalorder %s1010_s10, 1 }
   0xb   : > { %s1381_s28 = scalar_select %p274_p1, %s1268_s23, %s276_s26  }
   0xc   : > { %p1383_p5 = por %p287_p2, %p286_p0  ;;  %p1387_p6 = por %p293_p4, %p292_p3 }
   0xd   : > { %p1013_p7 = scmp.ge.s32.totalorder %s1272_s24, 1  ;;  %p352_p8 = scmp.lt.s32.totalorder %s1272_s24, 3 }
   0xf   : > { %p353_p9 = pnand %p1013_p7, %p352_p8 }
  0x10   : > { %p394_p10 = scmp.lt.s32.totalorder (!%p353_p9), %s1366_s9, 1  ;;  %v411_v2 = vlaneseq (!%p353_p9)  ;;  %s1274_s20 = smov (!%p353_p9), 1   ;;  %vm426_vm0 = vcmask (!%p353_p9), 7168   ;;  %v1202_v22 = vld [vmem:[%s1600_s2] sm:$0xff] (!%p353_p9)   ;;  %vm498_vm3 = vcmask (!%p353_p9), 392192   ;;  %v1276_v24 = vmov (!%p353_p9), 0  }
  0x11   : > { %356 = sbr.rel (%p353_p9) target bundleno = 1146 (0x47a), region = 64  ;;  %vm1018_vm1 = vmneg (!%p353_p9), %vm426_vm0  ;;  %s1275_s27 = smov (!%p353_p9), 127   ;;  %1062 = vmatprep.mubr.msk.bf16.mxu0 (!%p353_p9), %vm498_vm3, %v1202_v22  ;;  %1150 = vset.pattern.permute.xlu1 (!%p353_p9), %v1276_v24  ;;  %v464_v25 = vld [vmem:[%s1601_s3] sm:$0xff] (!%p353_p9)  ;;  %v465_v26 = vld [vmem:[%s1601_s3 + $0x8] sm:$0xff] (!%p353_p9)  ;;  %vm443_vm4 = vcmask (!%p353_p9), 1039360   ;;  %vm456_vm5 = vcmask (!%p353_p9), 1031168  }
  0x12   : > { %v412_v3 = vshrl.u32 (!%p353_p9), %v411_v2, 7  ;;  %vm1413_vm2 = vmpackc.low (!%p353_p9), %vm1018_vm1, %vm1018_vm1  ;;  %1151 = vset.pattern.permute.xlu0 (!%p353_p9), %v1276_v24  ;;  %v466_v27 = vld [vmem:[%s1601_s3 + $0x10] sm:$0xff] (!%p353_p9)  ;;  %v593_v28 = vld [vmem:[%s1602_s4] sm:$0xff] (!%p353_p9)  ;;  %vm777_vm6 = vcmask (!%p353_p9), 785408   ;;  %s1616_s10 = smov (!%p353_p9), 126   ;;  %s1039_s17 = sshll.u32 (!%p353_p9), %s1366_s9, 4 }
  0x13   : > { %v467_v29 = vld [vmem:[%s1601_s3 + $0x18] sm:$0xff] (!%p353_p9)  ;;  %v621_v30 = vld [vmem:[%s1603_s5] sm:$0xff] (!%p353_p9)  ;;  %v594_v31 = vld [vmem:[%s1602_s4 + $0x8] sm:$0xff] (!%p353_p9) }
  0x14   : > { %v1398_v4 = vsub.s32 (!%p353_p9), 0, %v412_v3  ;;  %v595_v32 = vld [vmem:[%s1602_s4 + $0x10] sm:$0xff] (!%p353_p9)  ;;  %v622_v33 = vld [vmem:[%s1603_s5 + $0x8] sm:$0xff] (!%p353_p9)  ;;  %v596_v35 = vld [vmem:[%s1602_s4 + $0x18] sm:$0xff] (!%p353_p9) }
  0x15   : > { %v623_v34 = vld [vmem:[%s1603_s5 + $0x10] sm:$0xff] (!%p353_p9)  ;;  %v624_v36 = vld [vmem:[%s1603_s5 + $0x18] sm:$0xff] (!%p353_p9)  ;;  %v1203_v55 = vld [vmem:[%s1600_s2 + $0x8] sm:$0xff] (!%p353_p9)  }
  0x16   : > { %v744_v15 = vld [vmem:[%s1605_s7 + $0x8] sm:$0xff] (!%p353_p9) }
  0x18   : > { %s395_s12 = scalar_select %p394_p10, %s1366_s9, 1 }
  0x19   : > { %s1278_s9 = smov [#allocation4]  }
  0x1a   : > { %s1042_s13 = sshll.u32 %s395_s12, 4  ;;  %s401_s16 = scalar_lea.vmem %s1599_s1, %s395_s12 }
  0x1b   : > { %s398_s19 = scalar_lea.vmem %s1598_s0, %s1042_s13  ;;  %v1403_v5 = vld [vmem:[%s401_s16] sm:$0x1]  ;;  %s1610_s12 = smov 126  }
  0x1c   : > { %v403_v6 = vld [vmem:[%s398_s19] sm:$0xff]  ;;  %v404_v7 = vld [vmem:[%s398_s19 + $0x8] sm:$0xff]  ;;  %v1407_v8 = vrot.slane %v1403_v5, %v1398_v4  ;;  %s392_s16 = sand.u32 1, %s1264_s22   ;;  %s1214_s13 = sshll.u32 %s1278_s9, 4  ;;  %s1215_s13 = int_to_ptr.vmem [resolvable:$false] %s1214_s13 }
  0x1d   : > { %s393_s18 = scalar_lea.vmem [#allocation4], %s392_s16  ;;  %s934_s26 = scalar_lea.sflag [#allocation5], %s392_s16 }
  0x1e   : > { %v416_v9 = vmul.f32 %v1407_v8, %v403_v6  ;;  %v417_v10 = vmul.f32 %v1407_v8, %v404_v7  ;;  %s1216_s14 = scalar_lea.vmem %s1215_s13, 32 }
  0x20   : > { %v1125_v11 = vpack.i.bf16 %v417_v10, %v416_v9 }
  0x22   : > { %1126 = vrot.lane.b32.xlu0 %v1125_v11, %s1274_s20 }
  0x94   : > { %v1127_v12 = vpop.permute.xlu0 %1126 }
  0x95   : > { %v1129_v13 = vunpack.i.h.bf16 %v1127_v12  ;;  %v1128_v14 = vunpack.i.l.bf16 %v1127_v12 }
  0x97   : > { %v1021_v16 = vpack.c.bf16 %v1129_v13, %v1128_v14  ;;  %v428_v17 = vsel %vm426_vm0, 0.0, %v1129_v13  ;;  %v430_v18 = vsel %vm426_vm0, %v1129_v13, 0.0  ;;  %v427_v19 = vsel %vm426_vm0, 0.0, %v1128_v14 }
  0x98   : > { %v1135_v20 = vpack.i.bf16 %v430_v18, %v428_v17  ;;  %v429_v21 = vsel %vm426_vm0, %v1128_v14, 0.0 }
  0x99   : > { %1056 = vmatprep.subr.msk.bf16.mxu0 %vm1413_vm2, %v1021_v16  ;;  %v1130_v23 = vpack.i.bf16 %v429_v21, %v427_v19 }
  0x9a   : > { %1136 = vrot.lane.b32.xlu1 %v1135_v20, %s1275_s27  ;;  %1057 = vmatpush3.bf16.msk.msra.mxu0 %vm1413_vm2, %v1021_v16 }
  0x9b   : > { %1131 = vrot.lane.b32.xlu0 %v1130_v23, %s1275_s27 }
  0x9e   : > { %1141 = vrot.lane.b32.xlu1 %v1130_v23, %s1610_s12 }
  0x9f   : > { %1146 = vrot.lane.b32.xlu0 %v1135_v20, %s1610_s12  ;;  %s1556_s12 = scalar_lea.hbm %s1608_s11, %s1039_s17 }
  0xa2   : > { %470 = vperm.xlu1 %1150, %v464_v25  }
  0xa3   : > { %475 = vperm.xlu0 %1151, %v465_v26  }
  0xa6   : > { %480 = vperm.xlu1 %1150, %v466_v27  }
  0xa7   : > { %599 = vperm.xlu0 %1151, %v593_v28  }
  0xaa   : > { %485 = vperm.xlu1 %1150, %v467_v29  }
  0xab   : > { %627 = vperm.xlu0 %1151, %v621_v30  }
  0xae   : > { %604 = vperm.xlu1 %1150, %v594_v31  }
  0xaf   : > { %609 = vperm.xlu0 %1151, %v595_v32  }
  0xb2   : > { %632 = vperm.xlu1 %1150, %v622_v33  }
  0xb3   : > { %637 = vperm.xlu0 %1151, %v623_v34  }
  0xb6   : > { %614 = vperm.xlu1 %1150, %v596_v35  }
  0xba   : > { %642 = vperm.xlu1 %1150, %v624_v36  }
 0x10c   : > { %v1137_v37 = vpop.permute.xlu1 %1136 }
 0x10d   : > { %v1139_v38 = vunpack.i.h.bf16 %v1137_v37  ;;  %v1138_v39 = vunpack.i.l.bf16 %v1137_v37  ;;  %v1132_v40 = vpop.permute.xlu0 %1131 }
 0x10e   : > { %v1134_v41 = vunpack.i.h.bf16 %v1132_v40  ;;  %v1133_v42 = vunpack.i.l.bf16 %v1132_v40 }
 0x10f   : > { %v445_v43 = vsel %vm443_vm4, %v1138_v39, %v1139_v38 }
 0x110   : > { %v1142_v44 = vpop.permute.xlu1 %1141  ;;  %v444_v45 = vsel %vm443_vm4, %v1133_v42, %v1134_v41 }
 0x111   : > { %v1144_v46 = vunpack.i.h.bf16 %v1142_v44  ;;  %v1143_v47 = vunpack.i.l.bf16 %v1142_v44  ;;  %v1147_v48 = vpop.permute.xlu0 %1146  ;;  %v462_v49 = vpack.c.bf16 %v445_v43, %v444_v45 }
 0x112   : > { %v1149_v50 = vunpack.i.h.bf16 %v1147_v48  ;;  %v1148_v51 = vunpack.i.l.bf16 %v1147_v48 }
 0x113   : > { %1058 = vmatprep.subr.bf16.mxu0 %v462_v49  ;;  %v457_v52 = vsel %vm456_vm5, %v1143_v47, %v1144_v46 }
 0x114   : > { %1059 = vmatpush3.bf16.msra.mxu0 %v462_v49  ;;  %v458_v53 = vsel %vm456_vm5, %v1148_v51, %v1149_v50 }
 0x115   : > { %v463_v54 = vpack.c.bf16 %v458_v53, %v457_v52 }
 0x117   : > { %1060 = vmatprep.subr.bf16.mxu0 %v463_v54 }
 0x118   : > { %1061 = vmatpush3.bf16.msra.mxu0 %v463_v54 }
 0x11b   : > { %1063 = vmatmul.mubr.msk.bf16.vlgmr.msra.gmra.mrb[0].mxu0 %vm498_vm3, %v1203_v55 }
 0x121   : > { %v471_v56 = vpop.permute.xlu1 %470 }
 0x122   : > { %v476_v62 = vpop.permute.xlu0 %475 }
 0x125   : > { %v481_v57 = vpop.permute.xlu1 %480 }
 0x126   : > { %v600_v40 = vpop.permute.xlu0 %599 }
 0x129   : > { %v486_v2 = vpop.permute.xlu1 %485 }
 0x12a   : > { %v628_v44 = vpop.permute.xlu0 %627 }
 0x12d   : > { %v605_v39 = vpop.permute.xlu1 %604 }
 0x12e   : > { %v610_v46 = vpop.permute.xlu0 %609 }
 0x131   : > { %v633_v43 = vpop.permute.xlu1 %632 }
 0x135   : > { %v615_v45 = vpop.permute.xlu1 %614 }
 0x1ee   : > { %v1064_v58 = vpop.f32.mrb[0].mxu0 }
 0x1ef   : > { %v539_v59 = vpop.f32.mrb[1].mxu0  ;;  %v548_v0 = vadd.f32 %v1064_v58, %v481_v57  ;;  %v638_v57 = vpop.permute.xlu0 %637 }
 0x1f0   : > { %v540_v60 = vadd.f32 %v539_v59, %v471_v56  ;;  %v1065_v61 = vpop.f32.mrb[2].mxu0  ;;  %v643_v56 = vpop.permute.xlu1 %642 }
 0x1f1   : > { %v542_v63 = vpop.f32.mrb[3].mxu0  ;;  %v551_v6 = vadd.f32 %v1065_v61, %v486_v2  ;;  %v556_v9 = vmax.f32 %v548_v0, 0.0 }
 0x1f2   : > { %v543_v1 = vadd.f32 %v542_v63, %v476_v62  ;;  %v554_v3 = vmax.f32 %v540_v60, 0.0 }
 0x1f3   : > { %v557_v11 = vmax.f32 %v551_v6, 0.0 }
 0x1f4   : > { %v555_v7 = vmax.f32 %v543_v1, 0.0 }
 0x1f6   : > { %v558_v10 = vadd.f32 %v555_v7, %v554_v3 }
 0x1f8   : > { %v559_v12 = vadd.f32 %v558_v10, %v556_v9 }
 0x1fa   : > { %v560_v13 = vadd.f32 %v559_v12, %v557_v11 }
 0x1fc   : > { %v561_v14 = vrot.slane %v560_v13, 4 }
 0x1fe   : > { %v562_v16 = vadd.f32 %v561_v14, %v560_v13 }
 0x200   : > { %v563_v17 = vrot.slane %v562_v16, 2 }
 0x202   : > { %v564_v18 = vadd.f32 %v563_v17, %v562_v16 }
 0x204   : > { %v565_v19 = vrot.slane %v564_v18, 1 }
 0x206   : > { %v566_v20 = vadd.f32 %v565_v19, %v564_v18 }
 0x208   : > { %v568_v21 = vmul.f32 0.03125, %v566_v20 }
 0x20a   : > { %v569_v22 = vsub.f32 %v554_v3, %v568_v21  ;;  %v570_v23 = vsub.f32 %v555_v7, %v568_v21  ;;  %v571_v24 = vsub.f32 %v556_v9, %v568_v21  ;;  %v572_v25 = vsub.f32 %v557_v11, %v568_v21 }
 0x20c   : > { %v573_v26 = vmul.f32 %v569_v22, %v569_v22  ;;  %v574_v27 = vmul.f32 %v570_v23, %v570_v23  ;;  %v575_v28 = vmul.f32 %v571_v24, %v571_v24  ;;  %v576_v30 = vmul.f32 %v572_v25, %v572_v25 }
 0x20e   : > { %v577_v29 = vadd.f32 %v574_v27, %v573_v26  ;;  %v1204_v27 = vld [vmem:[%s1604_s6] sm:$0xff]  }
 0x20f   : > { %1078 = vmatprep.mubr.msk.bf16.mxu1 %vm777_vm6, %v1204_v27 }
 0x210   : > { %v578_v31 = vadd.f32 %v577_v29, %v575_v28  ;;  %v743_v28 = vld [vmem:[%s1605_s7] sm:$0xff]  ;;  %v746_v29 = vld [vmem:[%s1605_s7 + $0x18] sm:$0xff] }
 0x212   : > { %v579_v32 = vadd.f32 %v578_v31, %v576_v30  ;;  %v745_v30 = vld [vmem:[%s1605_s7 + $0x10] sm:$0xff]  ;;  %v872_v31 = vld [vmem:[%s1606_s8 + $0x8] sm:$0xff] }
 0x214   : > { %v580_v33 = vrot.slane %v579_v32, 4 }
 0x216   : > { %v581_v34 = vadd.f32 %v580_v33, %v579_v32  ;;  %v871_v32 = vld [vmem:[%s1606_s8] sm:$0xff]  ;;  %v874_v33 = vld [vmem:[%s1606_s8 + $0x18] sm:$0xff] }
 0x218   : > { %v582_v35 = vrot.slane %v581_v34, 2 }
 0x21a   : > { %v583_v36 = vadd.f32 %v582_v35, %v581_v34  ;;  %v873_v34 = vld [vmem:[%s1606_s8 + $0x10] sm:$0xff]  ;;  %v920_v35 = vld [vmem:[#allocation3] sm:$0x1] }
 0x21c   : > { %v584_v37 = vrot.slane %v583_v36, 1 }
 0x21e   : > { %v585_v38 = vadd.f32 %v584_v37, %v583_v36  ;;  %v908_v36 = vld [vmem:[#allocation2] sm:$0x1] }
 0x220   : > { %v586_v41 = vmul.f32 0.03125, %v585_v38 }
 0x222   : > { %v587_v42 = vadd.f32 0.0001, %v586_v41 }
 0x224   : > { %1206 = vrsqrt.f32 %v587_v42 }
 0x22e   : > { %v1207_v47 = vpop.eup %1206 }
 0x22f   : > { %v590_v48 = vmul.f32 %v1207_v47, %v570_v23  ;;  %v591_v49 = vmul.f32 %v1207_v47, %v571_v24  ;;  %v592_v50 = vmul.f32 %v1207_v47, %v572_v25  ;;  %v589_v51 = vmul.f32 %v1207_v47, %v569_v22 }
 0x231   : > { %v618_v52 = vmul.f32 %v605_v39, %v590_v48  ;;  %v619_v53 = vmul.f32 %v610_v46, %v591_v49  ;;  %v620_v54 = vmul.f32 %v615_v45, %v592_v50  ;;  %v617_v55 = vmul.f32 %v600_v40, %v589_v51 }
 0x233   : > { %v647_v58 = vadd.f32 %v638_v57, %v619_v53  ;;  %v648_v59 = vadd.f32 %v643_v56, %v620_v54  ;;  %v645_v60 = vadd.f32 %v628_v44, %v617_v55  ;;  %v646_v61 = vadd.f32 %v633_v43, %v618_v52 }
 0x235   : > { %v655_v62 = vmul.f32 %v647_v58, %v1407_v8  ;;  %v656_v63 = vmul.f32 %v648_v59, %v1407_v8  ;;  %v653_v0 = vmul.f32 %v645_v60, %v1407_v8  ;;  %v654_v1 = vmul.f32 %v646_v61, %v1407_v8 }
 0x237   : > { %v1157_v2 = vpack.i.bf16 %v656_v63, %v655_v62  ;;  %v1152_v3 = vpack.i.bf16 %v654_v1, %v653_v0 }
 0x239   : > { %1158 = vrot.lane.b32.xlu1 %v1157_v2, %s1274_s20  ;;  %1153 = vrot.lane.b32.xlu0 %v1152_v3, %s1274_s20  ;;  %s946_s20 = sshll.u32 %s393_s18, 4  ;;  %s1558_s20 = int_to_ptr.vmem [resolvable:$true] %s946_s20 }
 0x23a   : > { %p1217_p0 = scmp.lt.s32.totalorder %s1558_s20, %s1215_s13 }
 0x2ab   : > { %v1159_v6 = vpop.permute.xlu1 %1158  ;;  %v1154_v7 = vpop.permute.xlu0 %1153 }
 0x2ac   : > { %v1161_v9 = vunpack.i.h.bf16 %v1159_v6  ;;  %v1160_v10 = vunpack.i.l.bf16 %v1159_v6  ;;  %v1156_v11 = vunpack.i.h.bf16 %v1154_v7  ;;  %v1155_v12 = vunpack.i.l.bf16 %v1154_v7 }
 0x2ae   : > { %v1030_v13 = vpack.c.bf16 %v1156_v11, %v1155_v12  ;;  %v674_v14 = vsel %vm426_vm0, 0.0, %v1156_v11  ;;  %v678_v16 = vsel %vm426_vm0, %v1156_v11, 0.0  ;;  %v673_v8 = vsel %vm426_vm0, 0.0, %v1155_v12 }
 0x2af   : > { %v1167_v17 = vpack.i.bf16 %v678_v16, %v674_v14  ;;  %v677_v18 = vsel %vm426_vm0, %v1155_v12, 0.0  ;;  %v1035_v19 = vpack.c.bf16 %v1161_v9, %v1160_v10  ;;  %v676_v21 = vsel %vm426_vm0, 0.0, %v1161_v9  ;;  %v1205_v12 = vld [vmem:[%s1604_s6 + $0x8] sm:$0xff]  }
 0x2b0   : > { %1066 = vmatprep.subr.msk.bf16.mxu1 %vm1413_vm2, %v1030_v13  ;;  %v1162_v20 = vpack.i.bf16 %v677_v18, %v673_v8  ;;  %v680_v22 = vsel %vm426_vm0, %v1161_v9, 0.0  ;;  %v675_v23 = vsel %vm426_vm0, 0.0, %v1160_v10  ;;  %v679_v24 = vsel %vm426_vm0, %v1160_v10, 0.0 }
 0x2b1   : > { %1168 = vrot.lane.b32.xlu1 %v1167_v17, %s1275_s27  ;;  %1067 = vmatpush3.bf16.msk.msra.mxu1 %vm1413_vm2, %v1030_v13  ;;  %v1177_v25 = vpack.i.bf16 %v680_v22, %v676_v21  ;;  %v1172_v26 = vpack.i.bf16 %v679_v24, %v675_v23 }
 0x2b2   : > { %1163 = vrot.lane.b32.xlu0 %v1162_v20, %s1275_s27  ;;  %1068 = vmatprep.subr.msk.bf16.mxu1 %vm1413_vm2, %v1035_v19 }
 0x2b5   : > { %1178 = vrot.lane.b32.xlu1 %v1177_v25, %s1275_s27  ;;  %1069 = vmatpush3.bf16.msk.msra.mxu1 %vm1413_vm2, %v1035_v19 }
 0x2b6   : > { %1173 = vrot.lane.b32.xlu0 %v1172_v26, %s1275_s27  ;;  %s1210_s27 = scalar_lea.vmem %s1558_s20, 16 }
 0x2b7   : > { %p1211_p11 = scmp.ne.s32.totalorder %s1558_s20, %s1210_s27  ;;  %p1218_p1 = scmp.lt.s32.totalorder %s1216_s14, %s1210_s27 }
 0x2b9   : > { %1188 = vrot.lane.b32.xlu1 %v1167_v17, %s1616_s10  ;;  %p1212_p12 = pnand %p1211_p11, %p1383_p5  ;;  %p1219_p2 = por %p1218_p1, %p1217_p0 }
 0x2ba   : > { %1183 = vrot.lane.b32.xlu0 %v1162_v20, %s1616_s10 }
 0x2bb   : > { %p1213_p13 = pneg %p1212_p12 }
 0x2bd   : > { %1198 = vrot.lane.b32.xlu1 %v1177_v25, %s1616_s10  ;;  %p1220_p3 = pnand %p1219_p2, %p1213_p13 }
 0x2be   : > { %1193 = vrot.lane.b32.xlu0 %v1172_v26, %s1616_s10 }
 0x2c1   : > { %754 = vperm.xlu1 %1150, %v744_v15  }
 0x2c2   : > { %749 = vperm.xlu0 %1151, %v743_v28  }
 0x2c5   : > { %764 = vperm.xlu1 %1150, %v746_v29  }
 0x2c6   : > { %759 = vperm.xlu0 %1151, %v745_v30  }
 0x2c9   : > { %882 = vperm.xlu1 %1150, %v872_v31  }
 0x2ca   : > { %877 = vperm.xlu0 %1151, %v871_v32  }
 0x2cd   : > { %892 = vperm.xlu1 %1150, %v874_v33  }
 0x2ce   : > { %887 = vperm.xlu0 %1151, %v873_v34  }
 0x2d1   : > { %923 = vperm.xlu1 %1150, %v920_v35  }
 0x2d2   : > { %911 = vperm.xlu0 %1151, %v908_v36  }
 0x323   : > { %v1169_v37 = vpop.permute.xlu1 %1168 }
 0x324   : > { %v1171_v38 = vunpack.i.h.bf16 %v1169_v37  ;;  %v1170_v39 = vunpack.i.l.bf16 %v1169_v37  ;;  %v1164_v40 = vpop.permute.xlu0 %1163 }
 0x325   : > { %v1166_v41 = vunpack.i.h.bf16 %v1164_v40  ;;  %v1165_v42 = vunpack.i.l.bf16 %v1164_v40 }
 0x326   : > { %v706_v43 = vsel %vm443_vm4, %v1170_v39, %v1171_v38 }
 0x327   : > { %v1179_v44 = vpop.permute.xlu1 %1178  ;;  %v705_v45 = vsel %vm443_vm4, %v1165_v42, %v1166_v41 }
 0x328   : > { %v1181_v46 = vunpack.i.h.bf16 %v1179_v44  ;;  %v1180_v47 = vunpack.i.l.bf16 %v1179_v44  ;;  %v1174_v48 = vpop.permute.xlu0 %1173  ;;  %v739_v49 = vpack.c.bf16 %v706_v43, %v705_v45 }
 0x329   : > { %v1176_v50 = vunpack.i.h.bf16 %v1174_v48  ;;  %v1175_v51 = vunpack.i.l.bf16 %v1174_v48 }
 0x32a   : > { %1070 = vmatprep.subr.bf16.mxu1 %v739_v49  ;;  %v708_v52 = vsel %vm443_vm4, %v1180_v47, %v1181_v46 }
 0x32b   : > { %1071 = vmatpush3.bf16.msra.mxu1 %v739_v49  ;;  %v1189_v53 = vpop.permute.xlu1 %1188  ;;  %v707_v54 = vsel %vm443_vm4, %v1175_v51, %v1176_v50 }
 0x32c   : > { %v1191_v55 = vunpack.i.h.bf16 %v1189_v53  ;;  %v1190_v56 = vunpack.i.l.bf16 %v1189_v53  ;;  %v1184_v57 = vpop.permute.xlu0 %1183  ;;  %v740_v58 = vpack.c.bf16 %v708_v52, %v707_v54 }
 0x32d   : > { %v1186_v59 = vunpack.i.h.bf16 %v1184_v57  ;;  %v1185_v60 = vunpack.i.l.bf16 %v1184_v57 }
 0x32e   : > { %1072 = vmatprep.subr.bf16.mxu1 %v740_v58  ;;  %v730_v61 = vsel %vm456_vm5, %v1190_v56, %v1191_v55 }
 0x32f   : > { %1073 = vmatpush3.bf16.msra.mxu1 %v740_v58  ;;  %v1199_v62 = vpop.permute.xlu1 %1198  ;;  %v729_v63 = vsel %vm456_vm5, %v1185_v60, %v1186_v59 }
 0x330   : > { %v1201_v0 = vunpack.i.h.bf16 %v1199_v62  ;;  %v1200_v1 = vunpack.i.l.bf16 %v1199_v62  ;;  %v1194_v2 = vpop.permute.xlu0 %1193  ;;  %v741_v3 = vpack.c.bf16 %v730_v61, %v729_v63 }
 0x331   : > { %v1196_v6 = vunpack.i.h.bf16 %v1194_v2  ;;  %v1195_v7 = vunpack.i.l.bf16 %v1194_v2 }
 0x332   : > { %1074 = vmatprep.subr.bf16.mxu1 %v741_v3  ;;  %v732_v9 = vsel %vm456_vm5, %v1200_v1, %v1201_v0 }
 0x333   : > { %1075 = vmatpush3.bf16.msra.mxu1 %v741_v3  ;;  %v731_v10 = vsel %vm456_vm5, %v1195_v7, %v1196_v6 }
 0x334   : > { %v742_v11 = vpack.c.bf16 %v732_v9, %v731_v10 }
 0x336   : > { %1076 = vmatprep.subr.bf16.mxu1 %v742_v11 }
 0x337   : > { %1077 = vmatpush3.bf16.msra.mxu1 %v742_v11 }
 0x33a   : > { %1079 = vmatmul.mubr.msk.bf16.vlgmr.msra.gmra.mrb[0].mxu1 %vm777_vm6, %v1205_v12 }
 0x340   : > { %v755_v14 = vpop.permute.xlu1 %754 }
 0x341   : > { %v750_v13 = vpop.permute.xlu0 %749 }
 0x344   : > { %v765_v23 = vpop.permute.xlu1 %764 }
 0x345   : > { %v760_v19 = vpop.permute.xlu0 %759 }
 0x348   : > { %v883_v59 = vpop.permute.xlu1 %882 }
 0x349   : > { %v878_v57 = vpop.permute.xlu0 %877 }
 0x34c   : > { %v893_v7 = vpop.permute.xlu1 %892 }
 0x34d   : > { %v888_v2 = vpop.permute.xlu0 %887 }
 0x40d   : > { %v1080_v16 = vpop.f32.mrb[0].mxu1 }
 0x40e   : > { %v818_v17 = vpop.f32.mrb[1].mxu1  ;;  %v827_v21 = vadd.f32 %v1080_v16, %v760_v19 }
 0x40f   : > { %v819_v8 = vadd.f32 %v818_v17, %v750_v13  ;;  %v1081_v18 = vpop.f32.mrb[2].mxu1  ;;  %v912_v17 = vpop.permute.xlu0 %911 }
 0x410   : > { %v821_v20 = vpop.f32.mrb[3].mxu1  ;;  %v830_v25 = vadd.f32 %v1081_v18, %v765_v23  ;;  %v835_v27 = vmax.f32 %v827_v21, 0.0  ;;  %v917_v18 = vrot.slane %v912_v17, %v1398_v4 }
 0x411   : > { %v822_v22 = vadd.f32 %v821_v20, %v755_v14  ;;  %v833_v24 = vmax.f32 %v819_v8, 0.0  ;;  %v924_v20 = vpop.permute.xlu1 %923 }
 0x412   : > { %v836_v28 = vmax.f32 %v830_v25, 0.0 }
 0x413   : > { %v834_v26 = vmax.f32 %v822_v22, 0.0  ;;  %v929_v22 = vrot.slane %v924_v20, %v1398_v4 }
 0x415   : > { %v837_v15 = vadd.f32 %v834_v26, %v833_v24 }
 0x417   : > { %v838_v29 = vadd.f32 %v837_v15, %v835_v27 }
 0x419   : > { %v839_v30 = vadd.f32 %v838_v29, %v836_v28 }
 0x41b   : > { %v840_v31 = vrot.slane %v839_v30, 4 }
 0x41d   : > { %v841_v32 = vadd.f32 %v840_v31, %v839_v30 }
 0x41f   : > { %v842_v33 = vrot.slane %v841_v32, 2 }
 0x421   : > { %v843_v34 = vadd.f32 %v842_v33, %v841_v32 }
 0x423   : > { %v844_v35 = vrot.slane %v843_v34, 1 }
 0x425   : > { %v845_v36 = vadd.f32 %v844_v35, %v843_v34 }
 0x427   : > { %v846_v37 = vmul.f32 0.03125, %v845_v36 }
 0x429   : > { %v847_v38 = vsub.f32 %v833_v24, %v846_v37  ;;  %v848_v39 = vsub.f32 %v834_v26, %v846_v37  ;;  %v849_v40 = vsub.f32 %v835_v27, %v846_v37  ;;  %v850_v41 = vsub.f32 %v836_v28, %v846_v37 }
 0x42b   : > { %v851_v42 = vmul.f32 %v847_v38, %v847_v38  ;;  %v852_v43 = vmul.f32 %v848_v39, %v848_v39  ;;  %v853_v44 = vmul.f32 %v849_v40, %v849_v40  ;;  %v854_v46 = vmul.f32 %v850_v41, %v850_v41 }
 0x42d   : > { %v855_v45 = vadd.f32 %v852_v43, %v851_v42 }
 0x42f   : > { %v856_v47 = vadd.f32 %v855_v45, %v853_v44 }
 0x431   : > { %v857_v48 = vadd.f32 %v856_v47, %v854_v46 }
 0x433   : > { %v858_v49 = vrot.slane %v857_v48, 4 }
 0x435   : > { %v859_v50 = vadd.f32 %v858_v49, %v857_v48 }
 0x437   : > { %v860_v51 = vrot.slane %v859_v50, 2 }
 0x439   : > { %v861_v52 = vadd.f32 %v860_v51, %v859_v50 }
 0x43b   : > { %v862_v53 = vrot.slane %v861_v52, 1 }
 0x43d   : > { %v863_v54 = vadd.f32 %v862_v53, %v861_v52 }
 0x43f   : > { %v864_v55 = vmul.f32 0.03125, %v863_v54 }
 0x441   : > { %v865_v56 = vadd.f32 0.0001, %v864_v55 }
 0x443   : > { %1208 = vrsqrt.f32 %v865_v56 }
 0x44d   : > { %v1209_v58 = vpop.eup %1208 }
 0x44e   : > { %v867_v60 = vmul.f32 %v1209_v58, %v847_v38  ;;  %v868_v61 = vmul.f32 %v1209_v58, %v848_v39  ;;  %v869_v62 = vmul.f32 %v1209_v58, %v849_v40  ;;  %v870_v63 = vmul.f32 %v1209_v58, %v850_v41 }
 0x450   : > { %v895_v0 = vmul.f32 %v878_v57, %v867_v60  ;;  %v896_v1 = vmul.f32 %v883_v59, %v868_v61  ;;  %v897_v3 = vmul.f32 %v888_v2, %v869_v62  ;;  %v898_v9 = vmul.f32 %v893_v7, %v870_v63 }
 0x452   : > { %v899_v6 = vadd.f32 %v896_v1, %v895_v0 }
 0x454   : > { %v900_v10 = vadd.f32 %v899_v6, %v897_v3 }
 0x456   : > { %v901_v11 = vadd.f32 %v900_v10, %v898_v9 }
 0x458   : > { %v902_v12 = vrot.slane %v901_v11, 4 }
 0x45a   : > { %v903_v13 = vadd.f32 %v902_v12, %v901_v11 }
 0x45c   : > { %v904_v14 = vrot.slane %v903_v13, 2 }
 0x45e   : > { %v905_v16 = vadd.f32 %v904_v14, %v903_v13 }
 0x460   : > { %v906_v8 = vrot.slane %v905_v16, 1 }
 0x462   : > { %v907_v19 = vadd.f32 %v906_v8, %v905_v16 }
 0x464   : > { %v918_v21 = vadd.f32 %v917_v18, %v907_v19 }
 0x466   : > { %v919_v23 = vmul.f32 %v918_v21, %v1403_v5 }
 0x468   : > { %v930_v24 = vadd.f32 %v929_v22, %v919_v23 }
 0x46a   : > { %v931_v25 = vmul.f32 %v930_v24, %v1403_v5 }
 0x46c   : > { %932 = vst [vmem:[%s393_s18] sm:$0x1] %v931_v25 }
 0x46d   : > { %1223 = shalt.err (!%p1220_p3)
}
 0x46e   : > { %s1224_s15 = scalar_lea.hbm %s1556_s12, 16  ;;  %s1228_s18 = scalar_lea.hbm %s1608_s11, 32 }
 0x46f   : > { %p1225_p4 = scmp.ne.s32.totalorder %s1556_s12, %s1224_s15  ;;  %p1229_p9 = scmp.lt.u32.totalorder %s1556_s12, %s1608_s11 }
 0x470   : > { %p1230_p10 = scmp.lt.u32.totalorder %s1228_s18, %s1224_s15  ;;  %p1232_p12 = scmp.lt.u32.totalorder %s1224_s15, %s1556_s12 }
 0x471   : > { %p1226_p7 = pnand %p1225_p4, %p1383_p5 }
 0x472   : > { %p1231_p11 = por %p1230_p10, %p1229_p9 }
 0x473   : > { %p1227_p8 = pneg %p1226_p7 }
 0x474   : > { %p1233_p13 = por %p1232_p12, %p1231_p11 }
 0x476   : > { %p1234_p0 = pnand %p1233_p13, %p1227_p8 }
 0x478   : > { %1237 = shalt.err (!%p1234_p0)
}
 0x479   : > { %1082 = dma.vmem_to_hbm [thread:$0]  (%p1383_p5), %s1558_s20, 16, %s1556_s12, %s934_s26  }
 0x47a PF: > { %p1088_p1 = scmp.ge.s32.totalorder %s1272_s24, 2  ;;  %s958_s27 = sand.u32 1, %s1260_s21  }
 0x47b   : > { %s959_s9 = scalar_lea.sflag [#allocation5], %s958_s27 }
 0x47c   : > { %p1085_p2 = pnand %p1088_p1, %p1387_p6 }
 0x47e   : > { %1255 = dma.done.wait (!%p1085_p2), %s959_s9, 16  }
 0x47f   : > { %1257 = vsyncadd (!%p1085_p2), %s959_s9, 4294967280  ;;  %p25_p3 = scmp.ge.s32.totalorder %s1370_s25, 4   ;;  %s1617_s21 = smov %s1264_s22 }
 0x480   : > { %s1618_s22 = smov %s1268_s23  ;;  %s1619_s23 = smov %s1381_s28 }
 0x481   : > { %s1620_s24 = smov %s1370_s25  ;;  %27 = sbr.rel (!%p25_p3) target bundleno = 6 (0x6), region = 102 }
 0x488   :  { %963 = vsyncpa [#allocation5], 1 }
 0x489   :  { %965 = vsyncpa [#allocation5 + $0x1], 1 }

</bundles_post_ra>
